<compile_context>
chip_gen: v6e
topology: v6e:2x2x1
jax: 0.10.0
libtpu: 0.0.40
codegen_flags: <defaults>
</compile_context>

<pallas_src>
import jax
import jax.numpy as jnp
from jax.experimental import pallas as pl
from jax.experimental.pallas import tpu as pltpu


def _round_up(x, m):
    return (x + m - 1) // m * m


def _pad2(a, rows, cols):
    r, c = a.shape
    return jnp.pad(a, ((0, rows - r), (0, cols - c)))


def _choose_tile(n_pad, candidates):
    for t in candidates:
        if n_pad % t == 0:
            return t
    return 128


def _fused_gcn_kernel(x_ref, a_ref, w1_ref, b1_ref, w2_ref, b2_ref, o_ref,
                      xw1_s, h_s, hw2_s, acc1, acc2):
    """Fused 2-layer GCN.

    Grid = (phase, i, k):
      phase 0:  H[i] = relu( sum_k A[i,k] @ (X[k] @ W1) + b1 )  -> h_s   (VMEM)
      phase 1:  P[i] =       sum_k A[i,k] @ (H[k] @ W2) + b2    -> o_ref (HBM)
    """
    p = pl.program_id(0)
    i = pl.program_id(1)
    k = pl.program_id(2)
    nk = pl.num_programs(2)

    tm, tk = a_ref.shape
    row_k = pl.multiple_of(k * tk, tk)   # element offset of this k block
    row_i = pl.multiple_of(i * tm, tm)   # element offset of this i block

    # ------------------ phase 0:  H = relu(A @ (X @ W1) + b1) ------------------
    @pl.when(p == 0)
    def _phase0():
        @pl.when(i == 0)
        def _build_xw1():
            # Tiny projection X @ W1 for this k block, computed exactly once.
            xw1 = jnp.dot(x_ref[...], w1_ref[...],
                          preferred_element_type=jnp.float32)
            xw1_s[pl.ds(row_k, tk), :] = xw1.astype(xw1_s.dtype)

        @pl.when(k == 0)
        def _init_acc1():
            acc1[...] = jnp.zeros_like(acc1)

        acc1[...] += jnp.dot(a_ref[...], xw1_s[pl.ds(row_k, tk), :],
                             preferred_element_type=jnp.float32)

        @pl.when(k == nk - 1)
        def _store_h():
            h = jnp.maximum(acc1[...] + b1_ref[...], 0.0)   # bias + ReLU epilogue
            h_s[pl.ds(row_i, tm), :] = h.astype(h_s.dtype)

    # ------------------ phase 1:  P = A @ (H @ W2) + b2 ------------------------
    @pl.when(p == 1)
    def _phase1():
        @pl.when(i == 0)
        def _build_hw2():
            hw2 = jnp.dot(h_s[pl.ds(row_k, tk), :], w2_ref[...],
                          preferred_element_type=jnp.float32)
            hw2_s[pl.ds(row_k, tk), :] = hw2.astype(hw2_s.dtype)

        @pl.when(k == 0)
        def _init_acc2():
            acc2[...] = jnp.zeros_like(acc2)

        acc2[...] += jnp.dot(a_ref[...], hw2_s[pl.ds(row_k, tk), :],
                             preferred_element_type=jnp.float32)

        @pl.when(k == nk - 1)
        def _store_out():
            o_ref[...] = (acc2[...] + b2_ref[...]).astype(o_ref.dtype)


def gcn_forward(adj, features, params):
    """Full GCN.forward (eval): gcn_1(+ReLU) -> dropout(identity) -> gcn_2."""
    n = adj.shape[0]
    f_in = features.shape[1]
    n_hidden = params["w1"].shape[1]
    n_classes = params["w2"].shape[1]

    # Pad every MXU-facing dim to a lane-dense multiple of 128.
    n_pad = _round_up(n, 128)
    f_pad = _round_up(f_in, 128)
    h_pad = _round_up(n_hidden, 128)
    c_pad = _round_up(n_classes, 128)

    # bf16 operands for the MXU (f32 accumulation inside the kernel).
    a_p = _pad2(adj, n_pad, n_pad).astype(jnp.bfloat16)
    x_p = _pad2(features, n_pad, f_pad).astype(jnp.bfloat16)
    w1_p = _pad2(params["w1"], f_pad, h_pad).astype(jnp.bfloat16)
    w2_p = _pad2(params["w2"], h_pad, c_pad).astype(jnp.bfloat16)
    b1_p = _pad2(params["b1"].reshape(1, -1), 1, h_pad).astype(jnp.float32)
    b2_p = _pad2(params["b2"].reshape(1, -1), 1, c_pad).astype(jnp.float32)

    # Tile sizes for streaming the N x N adjacency.
    # TODO(synk): per-generation tuning (v5e prefers TM=128; v7x has 64 MiB VMEM).
    tm = _choose_tile(n_pad, (256, 128))
    tk = _choose_tile(n_pad, (512, 256, 128))
    grid = (2, n_pad // tm, n_pad // tk)

    flops = (2 * n_pad * f_pad * h_pad          # X  @ W1
             + 2 * n_pad * n_pad * h_pad        # A  @ XW1
             + 2 * n_pad * h_pad * c_pad        # H  @ W2
             + 2 * n_pad * n_pad * c_pad)       # A  @ HW2
    bytes_accessed = (2 * n_pad * n_pad * 2     # A streamed once per phase (bf16)
                      + n_pad * f_pad * 2
                      + f_pad * h_pad * 2 + h_pad * c_pad * 2
                      + (h_pad + c_pad) * 4
                      + n_pad * c_pad * 4)      # logits

    out = pl.pallas_call(
        _fused_gcn_kernel,
        out_shape=jax.ShapeDtypeStruct((n_pad, c_pad), jnp.float32),
        grid_spec=pltpu.PrefetchScalarGridSpec(
            num_scalar_prefetch=0,
            grid=grid,
            in_specs=[
                pl.BlockSpec((tk, f_pad), lambda p, i, k: (k, 0)),     # X
                pl.BlockSpec((tm, tk), lambda p, i, k: (i, k)),        # A
                pl.BlockSpec((f_pad, h_pad), lambda p, i, k: (0, 0)),  # W1
                pl.BlockSpec((1, h_pad), lambda p, i, k: (0, 0)),      # b1
                pl.BlockSpec((h_pad, c_pad), lambda p, i, k: (0, 0)),  # W2
                pl.BlockSpec((1, c_pad), lambda p, i, k: (0, 0)),      # b2
            ],
            # During phase 0 the output block index is pinned to (0, 0) so no
            # garbage block is ever written back; real row blocks are emitted
            # contiguously during phase 1 (no output-block revisits).
            out_specs=pl.BlockSpec((tm, c_pad), lambda p, i, k: (i * p, 0)),
            scratch_shapes=[
                pltpu.VMEM((n_pad, h_pad), jnp.bfloat16),   # XW1 = X @ W1
                pltpu.VMEM((n_pad, h_pad), jnp.bfloat16),   # H (never hits HBM)
                pltpu.VMEM((n_pad, c_pad), jnp.bfloat16),   # HW2 = H @ W2
                pltpu.VMEM((tm, h_pad), jnp.float32),       # f32 acc, phase 0
                pltpu.VMEM((tm, c_pad), jnp.float32),       # f32 acc, phase 1
            ],
        ),
        compiler_params=pltpu.CompilerParams(
            # Phase 1 reads all of the VMEM-resident H from phase 0, so no grid
            # axis can be megacore-"parallel" inside the fused kernel.
            dimension_semantics=("arbitrary", "arbitrary", "arbitrary"),
            vmem_limit_bytes=32 * 1024 * 1024,
        ),
        cost_estimate=pl.CostEstimate(
            flops=flops, transcendentals=0, bytes_accessed=bytes_accessed),
    )(x_p, a_p, w1_p, b1_p, w2_p, b2_p)

    return out[:n, :n_classes]


def make_normalized_adjacency(key, n):
    """Random undirected graph + self loops, symmetric normalization D^-1/2 A D^-1/2."""
    raw = jax.random.bernoulli(key, p=0.15, shape=(n, n)).astype(jnp.float32)
    a = jnp.maximum(raw, raw.T)                        # symmetrize
    a = jnp.maximum(a, jnp.eye(n, dtype=jnp.float32))  # self loops (avoid zero degree)
    deg = jnp.sum(a, axis=1)
    d_inv_sqrt = 1.0 / jnp.sqrt(deg)
    return a * d_inv_sqrt[:, None] * d_inv_sqrt[None, :]


def init_params(key, in_feats, n_hidden, n_classes):
    k1, k2 = jax.random.split(key)

    def glorot(k, fan_in, fan_out):  # DGL GraphConv default is Glorot uniform
        limit = (6.0 / (fan_in + fan_out)) ** 0.5
        return jax.random.uniform(k, (fan_in, fan_out), jnp.float32, -limit, limit)

    return {
        "w1": glorot(k1, in_feats, n_hidden),
        "b1": jnp.zeros((n_hidden,), jnp.float32),
        "w2": glorot(k2, n_hidden, n_classes),
        "b2": jnp.zeros((n_classes,), jnp.float32),
    }


if __name__ == "__main__":
    # Small shapes: 64 nodes, 32 input features, 32 hidden, 8 classes.
    N, IN_FEATS, N_HIDDEN, N_CLASSES = 64, 32, 32, 8

    root = jax.random.PRNGKey(0)
    k_adj, k_feat, k_param = jax.random.split(root, 3)

    adj = make_normalized_adjacency(k_adj, N)
    features = jax.random.normal(k_feat, (N, IN_FEATS), dtype=jnp.float32)
    params = init_params(k_param, IN_FEATS, N_HIDDEN, N_CLASSES)

    preds = jax.jit(gcn_forward)(adj, features, params)
    jax.block_until_ready(preds)
    assert preds.shape == (N, N_CLASSES)

    # Reference #1: same math with the same bf16 MXU casts as the kernel (tight).
    bf = jnp.bfloat16
    a16, x16 = adj.astype(bf), features.astype(bf)
    xw1 = jnp.dot(x16, params["w1"].astype(bf),
                  preferred_element_type=jnp.float32).astype(bf)
    h16 = jnp.maximum(jnp.dot(a16, xw1, preferred_element_type=jnp.float32)
                      + params["b1"], 0.0).astype(bf)
    hw2 = jnp.dot(h16, params["w2"].astype(bf),
                  preferred_element_type=jnp.float32).astype(bf)
    ref_bf16 = jnp.dot(a16, hw2, preferred_element_type=jnp.float32) + params["b2"]
    assert jnp.allclose(preds, ref_bf16, atol=5e-3, rtol=5e-3)

    # Reference #2: original-module math in full f32 (loose: kernel uses bf16 MXU).
    h_f32 = jnp.maximum(adj @ features @ params["w1"] + params["b1"], 0.0)
    ref_f32 = adj @ h_f32 @ params["w2"] + params["b2"]
    assert jnp.allclose(preds, ref_f32, atol=6e-2, rtol=6e-2)

    print("KERNEL_OK")
</pallas_src>

<mosaic_0001>
module attributes {stable_mosaic.version = 11 : i64} {
  func.func @_fused_gcn_kernel(%arg0: i32, %arg1: i32, %arg2: i32, %arg3: memref<128x128xbf16, #tpu.memory_space<vmem>>, %arg4: memref<128x128xbf16, #tpu.memory_space<vmem>>, %arg5: memref<128x128xbf16, #tpu.memory_space<vmem>>, %arg6: memref<1x128xf32, #tpu.memory_space<vmem>>, %arg7: memref<128x128xbf16, #tpu.memory_space<vmem>>, %arg8: memref<1x128xf32, #tpu.memory_space<vmem>>, %arg9: memref<128x128xf32, #tpu.memory_space<vmem>>, %arg10: memref<128x128xbf16, #tpu.memory_space<vmem>>, %arg11: memref<128x128xbf16, #tpu.memory_space<vmem>>, %arg12: memref<128x128xbf16, #tpu.memory_space<vmem>>, %arg13: memref<128x128xf32, #tpu.memory_space<vmem>>, %arg14: memref<128x128xf32, #tpu.memory_space<vmem>>) attributes {dimension_semantics = [#tpu.dimension_semantics<arbitrary>, #tpu.dimension_semantics<arbitrary>, #tpu.dimension_semantics<arbitrary>], iteration_bounds = array<i64: 2, 1, 1>, scalar_prefetch = 0 : i64, scratch_operands = 5 : i64, tpu.core_type = #tpu.core_type<tc>, window_params = [{transform_indices = @transform_0, window_bounds = array<i64: 128, 128>}, {transform_indices = @transform_1, window_bounds = array<i64: 128, 128>}, {pipeline_mode = #tpu.pipeline_mode<synchronous>, transform_indices = @transform_2, window_bounds = array<i64: 128, 128>}, {pipeline_mode = #tpu.pipeline_mode<synchronous>, transform_indices = @transform_3, window_bounds = array<i64: 1, 128>}, {pipeline_mode = #tpu.pipeline_mode<synchronous>, transform_indices = @transform_4, window_bounds = array<i64: 128, 128>}, {pipeline_mode = #tpu.pipeline_mode<synchronous>, transform_indices = @transform_5, window_bounds = array<i64: 1, 128>}, {transform_indices = @transform_6, window_bounds = array<i64: 128, 128>}]} {
    %c128_i32 = arith.constant 128 : i32
    %0 = arith.muli %arg2, %c128_i32 : i32
    %1 = tpu.assume_multiple %0, 128 : i32
    %c128_i32_0 = arith.constant 128 : i32
    %2 = arith.muli %arg1, %c128_i32_0 : i32
    %3 = tpu.assume_multiple %2, 128 : i32
    %c0_i32 = arith.constant 0 : i32
    %4 = arith.cmpi eq, %arg0, %c0_i32 : i32
    %5 = arith.extui %4 : i1 to i32
    %c0_i32_1 = arith.constant 0 : i32
    %6 = arith.cmpi ne, %5, %c0_i32_1 : i32
    scf.if %6 {
      %c0_i32_3 = arith.constant 0 : i32
      %10 = arith.cmpi eq, %arg1, %c0_i32_3 : i32
      %11 = arith.extui %10 : i1 to i32
      %c0_i32_4 = arith.constant 0 : i32
      %12 = arith.cmpi ne, %11, %c0_i32_4 : i32
      scf.if %12 {
        %c0_15 = arith.constant 0 : index
        %c0_16 = arith.constant 0 : index
        %26 = vector.load %arg3[%c0_15, %c0_16] : memref<128x128xbf16, #tpu.memory_space<vmem>>, vector<128x128xbf16>
        %c0_17 = arith.constant 0 : index
        %c0_18 = arith.constant 0 : index
        %27 = vector.load %arg5[%c0_17, %c0_18] : memref<128x128xbf16, #tpu.memory_space<vmem>>, vector<128x128xbf16>
        %cst_19 = arith.constant dense<0.000000e+00> : vector<128x128xf32>
        %28 = tpu.matmul %26, %27, %cst_19 {dimension_numbers = #tpu.dot_dimension_numbers<[1], [0], [0], [1], [0, 0, 1, 1], [], []>} : vector<128x128xbf16>, vector<128x128xbf16>, vector<128x128xf32> -> vector<128x128xf32>
        %29 = arith.truncf %28 : vector<128x128xf32> to vector<128x128xbf16>
        %30 = arith.index_cast %1 : i32 to index
        %c0_20 = arith.constant 0 : index
        %31 = vector.load %arg10[%30, %c0_20] : memref<128x128xbf16, #tpu.memory_space<vmem>>, vector<128x128xbf16>
        tpu.vector_store %arg10[%30, %c0_20], %29 {strides = array<i32>} : memref<128x128xbf16, #tpu.memory_space<vmem>>, vector<128x128xbf16>,
      } else {
      }
      %c0_i32_5 = arith.constant 0 : i32
      %13 = arith.cmpi eq, %arg2, %c0_i32_5 : i32
      %14 = arith.extui %13 : i1 to i32
      %c0_i32_6 = arith.constant 0 : i32
      %15 = arith.cmpi ne, %14, %c0_i32_6 : i32
      scf.if %15 {
        %cst_15 = arith.constant 0.000000e+00 : f32
        %26 = vector.broadcast %cst_15 : f32 to vector<128x128xf32>
        %c0_16 = arith.constant 0 : index
        %c0_17 = arith.constant 0 : index
        %27 = vector.load %arg13[%c0_16, %c0_17] : memref<128x128xf32, #tpu.memory_space<vmem>>, vector<128x128xf32>
        tpu.vector_store %arg13[%c0_16, %c0_17], %26 {strides = array<i32>} : memref<128x128xf32, #tpu.memory_space<vmem>>, vector<128x128xf32>,
      } else {
      }
      %c0 = arith.constant 0 : index
      %c0_7 = arith.constant 0 : index
      %16 = vector.load %arg13[%c0, %c0_7] : memref<128x128xf32, #tpu.memory_space<vmem>>, vector<128x128xf32>
      %c0_8 = arith.constant 0 : index
      %c0_9 = arith.constant 0 : index
      %17 = vector.load %arg4[%c0_8, %c0_9] : memref<128x128xbf16, #tpu.memory_space<vmem>>, vector<128x128xbf16>
      %18 = arith.index_cast %1 : i32 to index
      %c0_10 = arith.constant 0 : index
      %19 = vector.load %arg10[%18, %c0_10] : memref<128x128xbf16, #tpu.memory_space<vmem>>, vector<128x128xbf16>
      %cst = arith.constant dense<0.000000e+00> : vector<128x128xf32>
      %20 = tpu.matmul %17, %19, %cst {dimension_numbers = #tpu.dot_dimension_numbers<[1], [0], [0], [1], [0, 0, 1, 1], [], []>} : vector<128x128xbf16>, vector<128x128xbf16>, vector<128x128xf32> -> vector<128x128xf32>
      %21 = arith.addf %16, %20 : vector<128x128xf32>
      %c0_11 = arith.constant 0 : index
      %c0_12 = arith.constant 0 : index
      %22 = vector.load %arg13[%c0_11, %c0_12] : memref<128x128xf32, #tpu.memory_space<vmem>>, vector<128x128xf32>
      tpu.vector_store %arg13[%c0_11, %c0_12], %21 {strides = array<i32>} : memref<128x128xf32, #tpu.memory_space<vmem>>, vector<128x128xf32>,
      %c0_i32_13 = arith.constant 0 : i32
      %23 = arith.cmpi eq, %arg2, %c0_i32_13 : i32
      %24 = arith.extui %23 : i1 to i32
      %c0_i32_14 = arith.constant 0 : i32
      %25 = arith.cmpi ne, %24, %c0_i32_14 : i32
      scf.if %25 {
        %c0_15 = arith.constant 0 : index
        %c0_16 = arith.constant 0 : index
        %26 = vector.load %arg13[%c0_15, %c0_16] : memref<128x128xf32, #tpu.memory_space<vmem>>, vector<128x128xf32>
        %c0_17 = arith.constant 0 : index
        %c0_18 = arith.constant 0 : index
        %27 = vector.load %arg6[%c0_17, %c0_18] : memref<1x128xf32, #tpu.memory_space<vmem>>, vector<1x128xf32>
        %28 = vector.broadcast %27 : vector<1x128xf32> to vector<128x128xf32>
        %29 = arith.addf %26, %28 : vector<128x128xf32>
        %cst_19 = arith.constant 0.000000e+00 : f32
        %30 = vector.broadcast %cst_19 : f32 to vector<128x128xf32>
        %31 = arith.maximumf %29, %30 : vector<128x128xf32>
        %32 = arith.truncf %31 : vector<128x128xf32> to vector<128x128xbf16>
        %33 = arith.index_cast %3 : i32 to index
        %c0_20 = arith.constant 0 : index
        %34 = vector.load %arg11[%33, %c0_20] : memref<128x128xbf16, #tpu.memory_space<vmem>>, vector<128x128xbf16>
        tpu.vector_store %arg11[%33, %c0_20], %32 {strides = array<i32>} : memref<128x128xbf16, #tpu.memory_space<vmem>>, vector<128x128xbf16>,
      } else {
      }
    } else {
    }
    %c1_i32 = arith.constant 1 : i32
    %7 = arith.cmpi eq, %arg0, %c1_i32 : i32
    %8 = arith.extui %7 : i1 to i32
    %c0_i32_2 = arith.constant 0 : i32
    %9 = arith.cmpi ne, %8, %c0_i32_2 : i32
    scf.if %9 {
      %c0_i32_3 = arith.constant 0 : i32
      %10 = arith.cmpi eq, %arg1, %c0_i32_3 : i32
      %11 = arith.extui %10 : i1 to i32
      %c0_i32_4 = arith.constant 0 : i32
      %12 = arith.cmpi ne, %11, %c0_i32_4 : i32
      scf.if %12 {
        %26 = arith.index_cast %1 : i32 to index
        %c0_15 = arith.constant 0 : index
        %27 = vector.load %arg11[%26, %c0_15] : memref<128x128xbf16, #tpu.memory_space<vmem>>, vector<128x128xbf16>
        %c0_16 = arith.constant 0 : index
        %c0_17 = arith.constant 0 : index
        %28 = vector.load %arg7[%c0_16, %c0_17] : memref<128x128xbf16, #tpu.memory_space<vmem>>, vector<128x128xbf16>
        %cst_18 = arith.constant dense<0.000000e+00> : vector<128x128xf32>
        %29 = tpu.matmul %27, %28, %cst_18 {dimension_numbers = #tpu.dot_dimension_numbers<[1], [0], [0], [1], [0, 0, 1, 1], [], []>} : vector<128x128xbf16>, vector<128x128xbf16>, vector<128x128xf32> -> vector<128x128xf32>
        %30 = arith.truncf %29 : vector<128x128xf32> to vector<128x128xbf16>
        %31 = arith.index_cast %1 : i32 to index
        %c0_19 = arith.constant 0 : index
        %32 = vector.load %arg12[%31, %c0_19] : memref<128x128xbf16, #tpu.memory_space<vmem>>, vector<128x128xbf16>
        tpu.vector_store %arg12[%31, %c0_19], %30 {strides = array<i32>} : memref<128x128xbf16, #tpu.memory_space<vmem>>, vector<128x128xbf16>,
      } else {
      }
      %c0_i32_5 = arith.constant 0 : i32
      %13 = arith.cmpi eq, %arg2, %c0_i32_5 : i32
      %14 = arith.extui %13 : i1 to i32
      %c0_i32_6 = arith.constant 0 : i32
      %15 = arith.cmpi ne, %14, %c0_i32_6 : i32
      scf.if %15 {
        %cst_15 = arith.constant 0.000000e+00 : f32
        %26 = vector.broadcast %cst_15 : f32 to vector<128x128xf32>
        %c0_16 = arith.constant 0 : index
        %c0_17 = arith.constant 0 : index
        %27 = vector.load %arg14[%c0_16, %c0_17] : memref<128x128xf32, #tpu.memory_space<vmem>>, vector<128x128xf32>
        tpu.vector_store %arg14[%c0_16, %c0_17], %26 {strides = array<i32>} : memref<128x128xf32, #tpu.memory_space<vmem>>, vector<128x128xf32>,
      } else {
      }
      %c0 = arith.constant 0 : index
      %c0_7 = arith.constant 0 : index
      %16 = vector.load %arg14[%c0, %c0_7] : memref<128x128xf32, #tpu.memory_space<vmem>>, vector<128x128xf32>
      %c0_8 = arith.constant 0 : index
      %c0_9 = arith.constant 0 : index
      %17 = vector.load %arg4[%c0_8, %c0_9] : memref<128x128xbf16, #tpu.memory_space<vmem>>, vector<128x128xbf16>
      %18 = arith.index_cast %1 : i32 to index
      %c0_10 = arith.constant 0 : index
      %19 = vector.load %arg12[%18, %c0_10] : memref<128x128xbf16, #tpu.memory_space<vmem>>, vector<128x128xbf16>
      %cst = arith.constant dense<0.000000e+00> : vector<128x128xf32>
      %20 = tpu.matmul %17, %19, %cst {dimension_numbers = #tpu.dot_dimension_numbers<[1], [0], [0], [1], [0, 0, 1, 1], [], []>} : vector<128x128xbf16>, vector<128x128xbf16>, vector<128x128xf32> -> vector<128x128xf32>
      %21 = arith.addf %16, %20 : vector<128x128xf32>
      %c0_11 = arith.constant 0 : index
      %c0_12 = arith.constant 0 : index
      %22 = vector.load %arg14[%c0_11, %c0_12] : memref<128x128xf32, #tpu.memory_space<vmem>>, vector<128x128xf32>
      tpu.vector_store %arg14[%c0_11, %c0_12], %21 {strides = array<i32>} : memref<128x128xf32, #tpu.memory_space<vmem>>, vector<128x128xf32>,
      %c0_i32_13 = arith.constant 0 : i32
      %23 = arith.cmpi eq, %arg2, %c0_i32_13 : i32
      %24 = arith.extui %23 : i1 to i32
      %c0_i32_14 = arith.constant 0 : i32
      %25 = arith.cmpi ne, %24, %c0_i32_14 : i32
      scf.if %25 {
        %c0_15 = arith.constant 0 : index
        %c0_16 = arith.constant 0 : index
        %26 = vector.load %arg14[%c0_15, %c0_16] : memref<128x128xf32, #tpu.memory_space<vmem>>, vector<128x128xf32>
        %c0_17 = arith.constant 0 : index
        %c0_18 = arith.constant 0 : index
        %27 = vector.load %arg8[%c0_17, %c0_18] : memref<1x128xf32, #tpu.memory_space<vmem>>, vector<1x128xf32>
        %28 = vector.broadcast %27 : vector<1x128xf32> to vector<128x128xf32>
        %29 = arith.addf %26, %28 : vector<128x128xf32>
        %c0_19 = arith.constant 0 : index
        %c0_20 = arith.constant 0 : index
        %30 = vector.load %arg9[%c0_19, %c0_20] : memref<128x128xf32, #tpu.memory_space<vmem>>, vector<128x128xf32>
        tpu.vector_store %arg9[%c0_19, %c0_20], %29 {strides = array<i32>} : memref<128x128xf32, #tpu.memory_space<vmem>>, vector<128x128xf32>,
      } else {
      }
    } else {
    }
    return
  }
  func.func @transform_0(%arg0: i32, %arg1: i32, %arg2: i32) -> (i32, i32) {
    %c0_i32 = arith.constant 0 : i32
    %c0_i32_0 = arith.constant 0 : i32
    return %arg2, %c0_i32 : i32, i32
  }
  func.func @transform_1(%arg0: i32, %arg1: i32, %arg2: i32) -> (i32, i32) {
    %c0_i32 = arith.constant 0 : i32
    return %arg1, %arg2 : i32, i32
  }
  func.func @transform_2(%arg0: i32, %arg1: i32, %arg2: i32) -> (i32, i32) {
    %c0_i32 = arith.constant 0 : i32
    %c0_i32_0 = arith.constant 0 : i32
    %c0_i32_1 = arith.constant 0 : i32
    return %c0_i32, %c0_i32_0 : i32, i32
  }
  func.func @transform_3(%arg0: i32, %arg1: i32, %arg2: i32) -> (i32, i32) {
    %c0_i32 = arith.constant 0 : i32
    %c0_i32_0 = arith.constant 0 : i32
    %c0_i32_1 = arith.constant 0 : i32
    return %c0_i32, %c0_i32_0 : i32, i32
  }
  func.func @transform_4(%arg0: i32, %arg1: i32, %arg2: i32) -> (i32, i32) {
    %c0_i32 = arith.constant 0 : i32
    %c0_i32_0 = arith.constant 0 : i32
    %c0_i32_1 = arith.constant 0 : i32
    return %c0_i32, %c0_i32_0 : i32, i32
  }
  func.func @transform_5(%arg0: i32, %arg1: i32, %arg2: i32) -> (i32, i32) {
    %c0_i32 = arith.constant 0 : i32
    %c0_i32_0 = arith.constant 0 : i32
    %c0_i32_1 = arith.constant 0 : i32
    return %c0_i32, %c0_i32_0 : i32, i32
  }
  func.func @transform_6(%arg0: i32, %arg1: i32, %arg2: i32) -> (i32, i32) {
    %0 = arith.muli %arg1, %arg0 : i32
    %c0_i32 = arith.constant 0 : i32
    %c0_i32_0 = arith.constant 0 : i32
    return %0, %c0_i32 : i32, i32
  }
}

</mosaic_0001>

<bundles_post_ra>
// kernel: gcn_forward.1
= control target key start
LH: loop header
LB: loop body
LE: loop exit
PB: predicated region body
PF: predicated region fallthrough
CT: control target
= control target key end

     0   :  { %s2503_s21 = smov 0   ;;  %s2505_s22 = smov 0   ;;  %s2708_s0 = inlined_call_operand.vmem [shape: bf16[128,128], index: 0, kind: input, shape index: {}]   ;;  %s2709_s1 = inlined_call_operand.vmem [shape: bf16[128,128], index: 1, kind: input, shape index: {}]   ;;  %s2710_s2 = inlined_call_operand.vmem [shape: bf16[128,128], index: 2, kind: input, shape index: {}]   ;;  %s2711_s3 = inlined_call_operand.vmem [shape: f32[1,128], index: 3, kind: input, shape index: {}]   ;;  %s2712_s4 = inlined_call_operand.vmem [shape: bf16[128,128], index: 4, kind: input, shape index: {}]   ;;  %s2713_s5 = inlined_call_operand.vmem [shape: f32[1,128], index: 5, kind: input, shape index: {}]   ;;  %s2714_s6 = inlined_call_operand.vmem [shape: f32[128,128], index: 6, kind: output, shape index: {}]  }
   0x1   :  { %s2507_s23 = smov 0  }
   0x2 LB: > { %s35_s24 = sadd.s32 1, %s2462_s22  ;;  %p1854_p0 = scmp.ge.s32.totalorder %s2466_s23, 1  ;;  %s2466_s23 = sphi %s2507_s23, %s16_s23   ;;  %s2462_s22 = sphi %s2505_s22, %s2716_s22   ;;  %s2458_s21 = sphi %s2503_s21, %s2715_s21  }
   0x3   : > { %p37_p1 = scmp.ge.s32.totalorder %s35_s24, 2  ;;  %p250_p2 = scmp.lt.s32.totalorder %s2466_s23, 3 }
   0x5   : > { %s2718_s24 = smov (%p37_p1, %s35_s24), 0  ;;  %p251_p3 = pnand %p1854_p0, %p250_p2 }
   0x6   : > { %p1855_p4 = scmp.ne.s32.totalorder (!%p251_p3), %s2458_s21, 0 }
   0x7   : > { %254 = sbr.rel (%p251_p3) target bundleno = 1072 (0x430), region = 44 }
   0xc   : > { %318 = sbr.rel (%p1855_p4) target bundleno = 543 (0x21f), region = 48 }
  0x11   : > { %v2380_v0 = vld [vmem:[%s2710_s2 + $0x38] sm:$0xff]   ;;  %v2381_v1 = vld [vmem:[%s2710_s2 + $0x30] sm:$0xff]   ;;  %v2382_v2 = vld [vmem:[%s2710_s2 + $0x28] sm:$0xff]  }
  0x12   : > { %2228 = vmatprep.subr.bf16.mxu0 %v2380_v0  ;;  %v2383_v3 = vld [vmem:[%s2710_s2 + $0x20] sm:$0xff]   ;;  %v2384_v5 = vld [vmem:[%s2710_s2 + $0x18] sm:$0xff]   ;;  %v2385_v6 = vld [vmem:[%s2710_s2 + $0x10] sm:$0xff]  }
  0x13   : > { %2229 = vmatpush3.bf16.msra.mxu0 %v2380_v0  ;;  %v2388_v4 = vld [vmem:[%s2708_s0] sm:$0xff]   ;;  %v2386_v7 = vld [vmem:[%s2710_s2 + $0x8] sm:$0xff]   ;;  %v2390_v10 = vld [vmem:[%s2708_s0 + $0x10] sm:$0xff]  }
  0x14   : > { %2230 = vmatprep.subr.bf16.mxu0 %v2381_v1  ;;  %2244 = vmatprep.mubr.bf16.mxu0 %v2388_v4  ;;  %v2387_v8 = vld [vmem:[%s2710_s2] sm:$0xff]   ;;  %v2389_v9 = vld [vmem:[%s2708_s0 + $0x8] sm:$0xff]   ;;  %v2391_v11 = vld [vmem:[%s2708_s0 + $0x18] sm:$0xff]  }
  0x15   : > { %v2392_v12 = vld [vmem:[%s2708_s0 + $0x20] sm:$0xff]   ;;  %v2393_v13 = vld [vmem:[%s2708_s0 + $0x28] sm:$0xff]   ;;  %v2394_v14 = vld [vmem:[%s2708_s0 + $0x30] sm:$0xff]  }
  0x16   : > { %v2395_v15 = vld [vmem:[%s2708_s0 + $0x38] sm:$0xff]   ;;  %v2404_v16 = vld [vmem:[%s2709_s1] sm:$0xff]   ;;  %v2405_v49 = vld [vmem:[%s2709_s1 + $0x8] sm:$0xff]  }
  0x17   : > { %2231 = vmatpush3.bf16.msra.mxu0 %v2381_v1  ;;  %2276 = vmatprep.mubr.bf16.mxu1 %v2404_v16  ;;  %v2406_v50 = vld [vmem:[%s2709_s1 + $0x10] sm:$0xff]   ;;  %v2407_v51 = vld [vmem:[%s2709_s1 + $0x18] sm:$0xff]   ;;  %v2408_v52 = vld [vmem:[%s2709_s1 + $0x20] sm:$0xff]  }
  0x18   : > { %2232 = vmatprep.subr.bf16.mxu0 %v2382_v2  ;;  %v2409_v53 = vld [vmem:[%s2709_s1 + $0x28] sm:$0xff]   ;;  %v2410_v54 = vld [vmem:[%s2709_s1 + $0x30] sm:$0xff]   ;;  %v2411_v55 = vld [vmem:[%s2709_s1 + $0x38] sm:$0xff]  }
  0x19   : > { %v1904_v57 = vld [vmem:[%s2711_s3] ss:$0 sm:$0xff] }
  0x1b   : > { %2233 = vmatpush3.bf16.msra.mxu0 %v2382_v2 }
  0x1c   : > { %2234 = vmatprep.subr.bf16.mxu0 %v2383_v3 }
  0x1f   : > { %2235 = vmatpush3.bf16.msra.mxu0 %v2383_v3 }
  0x20   : > { %2236 = vmatprep.subr.bf16.mxu0 %v2384_v5 }
  0x23   : > { %2237 = vmatpush3.bf16.msra.mxu0 %v2384_v5 }
  0x24   : > { %2238 = vmatprep.subr.bf16.mxu0 %v2385_v6 }
  0x27   : > { %2239 = vmatpush3.bf16.msra.mxu0 %v2385_v6 }
  0x28   : > { %2240 = vmatprep.subr.bf16.mxu0 %v2386_v7 }
  0x2b   : > { %2241 = vmatpush3.bf16.msra.mxu0 %v2386_v7 }
  0x2c   : > { %2242 = vmatprep.subr.bf16.mxu0 %v2387_v8 }
  0x2f   : > { %2243 = vmatpush3.bf16.msra.mxu0 %v2387_v8 }
  0x32   : > { %2245 = vmatmul.mubr.bf16.vlgmr.msra.gmra.mxu0 %v2389_v9 }
  0x33   : > { %2248 = vmatprep.mubr.bf16.mxu0 %v2390_v10 }
  0x3a   : > { %2249 = vmatmul.mubr.bf16.gmra.mxu0 %v2391_v11 }
  0x3b   : > { %2252 = vmatprep.mubr.bf16.mxu0 %v2392_v12 }
  0x42   : > { %2253 = vmatmul.mubr.bf16.gmra.mxu0 %v2393_v13 }
  0x43   : > { %2256 = vmatprep.mubr.bf16.mxu0 %v2394_v14 }
  0x4a   : > { %2257 = vmatmul.mubr.bf16.gmra.mxu0 %v2395_v15 }
  0xf2   : > { %v2246_v17 = vpop.f32.mrf.mxu0 }
  0xf4   : > { %v485_v18 = vpop.f32.mrf.mxu0 }
  0xf6   : > { %v2247_v19 = vpop.f32.mrf.mxu0 }
  0xf7   : > { %v2031_v20 = vpack.c.bf16 %v2247_v19, %v2246_v17 }
  0xf8   : > { %v488_v21 = vpop.f32.mrf.mxu0 }
  0xf9   : > { %2143 = vst [vmem:[#allocation2 + $0x8] sm:$0xff] %v2031_v20   ;;  %v2026_v22 = vpack.c.bf16 %v488_v21, %v485_v18 }
  0xfa   : > { %v2250_v23 = vpop.f32.mrf.mxu0 }
  0xfb   : > { %2027 = vst [vmem:[#allocation2] sm:$0xff] %v2026_v22  }
  0xfc   : > { %v501_v24 = vpop.f32.mrf.mxu0 }
  0xfe   : > { %v2251_v25 = vpop.f32.mrf.mxu0 }
  0xff   : > { %v2041_v26 = vpack.c.bf16 %v2251_v25, %v2250_v23 }
 0x100   : > { %v504_v27 = vpop.f32.mrf.mxu0  ;;  %v2402_v47 = vld [vmem:[#allocation2 + $0x8] sm:$0xff]  }
 0x101   : > { %2145 = vst [vmem:[#allocation2 + $0x18] sm:$0xff] %v2041_v26   ;;  %v2036_v28 = vpack.c.bf16 %v504_v27, %v501_v24 }
 0x102   : > { %v2254_v29 = vpop.f32.mrf.mxu0  ;;  %v2403_v48 = vld [vmem:[#allocation2] sm:$0xff]  }
 0x103   : > { %2144 = vst [vmem:[#allocation2 + $0x10] sm:$0xff] %v2036_v28  }
 0x104   : > { %v517_v30 = vpop.f32.mrf.mxu0 }
 0x106   : > { %v2255_v31 = vpop.f32.mrf.mxu0 }
 0x107   : > { %v2051_v32 = vpack.c.bf16 %v2255_v31, %v2254_v29 }
 0x108   : > { %v520_v33 = vpop.f32.mrf.mxu0  ;;  %v2400_v45 = vld [vmem:[#allocation2 + $0x18] sm:$0xff]  }
 0x109   : > { %2147 = vst [vmem:[#allocation2 + $0x28] sm:$0xff] %v2051_v32   ;;  %v2046_v34 = vpack.c.bf16 %v520_v33, %v517_v30 }
 0x10a   : > { %v2258_v35 = vpop.f32.mrf.mxu0  ;;  %v2401_v46 = vld [vmem:[#allocation2 + $0x10] sm:$0xff]  }
 0x10b   : > { %2146 = vst [vmem:[#allocation2 + $0x20] sm:$0xff] %v2046_v34  }
 0x10c   : > { %v533_v36 = vpop.f32.mrf.mxu0 }
 0x10e   : > { %v2259_v37 = vpop.f32.mrf.mxu0 }
 0x10f   : > { %v2061_v38 = vpack.c.bf16 %v2259_v37, %v2258_v35 }
 0x110   : > { %v536_v39 = vpop.f32.mrf.mxu0  ;;  %v2398_v43 = vld [vmem:[#allocation2 + $0x28] sm:$0xff]  }
 0x111   : > { %2149 = vst [vmem:[#allocation2 + $0x38] sm:$0xff] %v2061_v38   ;;  %v2056_v40 = vpack.c.bf16 %v536_v39, %v533_v36 }
 0x112   : > { %v2399_v44 = vld [vmem:[#allocation2 + $0x20] sm:$0xff]  }
 0x113   : > { %2148 = vst [vmem:[#allocation2 + $0x30] sm:$0xff] %v2056_v40  }
 0x118   : > { %v2396_v41 = vld [vmem:[#allocation2 + $0x38] sm:$0xff]  }
 0x119   : > { %2260 = vmatprep.subr.bf16.mxu1 %v2396_v41 }
 0x11a   : > { %v2397_v42 = vld [vmem:[#allocation2 + $0x30] sm:$0xff]   ;;  %2261 = vmatpush3.bf16.msra.mxu1 %v2396_v41 }
 0x11b   : > { %2262 = vmatprep.subr.bf16.mxu1 %v2397_v42 }
 0x11e   : > { %2263 = vmatpush3.bf16.msra.mxu1 %v2397_v42 }
 0x11f   : > { %2264 = vmatprep.subr.bf16.mxu1 %v2398_v43 }
 0x122   : > { %2265 = vmatpush3.bf16.msra.mxu1 %v2398_v43 }
 0x123   : > { %2266 = vmatprep.subr.bf16.mxu1 %v2399_v44 }
 0x126   : > { %2267 = vmatpush3.bf16.msra.mxu1 %v2399_v44 }
 0x127   : > { %2268 = vmatprep.subr.bf16.mxu1 %v2400_v45 }
 0x12a   : > { %2269 = vmatpush3.bf16.msra.mxu1 %v2400_v45 }
 0x12b   : > { %2270 = vmatprep.subr.bf16.mxu1 %v2401_v46 }
 0x12e   : > { %2271 = vmatpush3.bf16.msra.mxu1 %v2401_v46 }
 0x12f   : > { %2272 = vmatprep.subr.bf16.mxu1 %v2402_v47 }
 0x132   : > { %2273 = vmatpush3.bf16.msra.mxu1 %v2402_v47 }
 0x133   : > { %2274 = vmatprep.subr.bf16.mxu1 %v2403_v48 }
 0x136   : > { %2275 = vmatpush3.bf16.msra.mxu1 %v2403_v48 }
 0x139   : > { %2277 = vmatmul.mubr.bf16.vlgmr.msra.gmra.mxu1 %v2405_v49 }
 0x13a   : > { %2280 = vmatprep.mubr.bf16.mxu1 %v2406_v50 }
 0x141   : > { %2281 = vmatmul.mubr.bf16.gmra.mxu1 %v2407_v51 }
 0x142   : > { %2284 = vmatprep.mubr.bf16.mxu1 %v2408_v52 }
 0x149   : > { %2285 = vmatmul.mubr.bf16.gmra.mxu1 %v2409_v53 }
 0x14a   : > { %2288 = vmatprep.mubr.bf16.mxu1 %v2410_v54 }
 0x151   : > { %2289 = vmatmul.mubr.bf16.gmra.mxu1 %v2411_v55 }
 0x1f9   : > { %v2278_v56 = vpop.f32.mrf.mxu1 }
 0x1fa   : > { %v957_v59 = vadd.f32 %v2278_v56, %v1904_v57 }
 0x1fb   : > { %v834_v58 = vpop.f32.mrf.mxu1 }
 0x1fc   : > { %v955_v61 = vadd.f32 %v1904_v57, %v834_v58  ;;  %v973_v0 = vmax.f32 %v957_v59, 0.0 }
 0x1fd   : > { %v2279_v60 = vpop.f32.mrf.mxu1 }
 0x1fe   : > { %v958_v62 = vadd.f32 %v2279_v60, %v1904_v57  ;;  %v971_v4 = vmax.f32 %v955_v61, 0.0 }
 0x1ff   : > { %v837_v63 = vpop.f32.mrf.mxu1 }
 0x200   : > { %v974_v1 = vmax.f32 %v958_v62, 0.0  ;;  %v956_v2 = vadd.f32 %v1904_v57, %v837_v63 }
 0x201   : > { %v2282_v3 = vpop.f32.mrf.mxu1 }
 0x202   : > { %v2071_v5 = vpack.c.bf16 %v974_v1, %v973_v0  ;;  %v972_v6 = vmax.f32 %v956_v2, 0.0  ;;  %v961_v9 = vadd.f32 %v2282_v3, %v1904_v57 }
 0x203   : > { %v850_v7 = vpop.f32.mrf.mxu1 }
 0x204   : > { %2150 = vst [vmem:[#allocation3 + $0x8] sm:$0xff] %v2071_v5   ;;  %v2066_v8 = vpack.c.bf16 %v972_v6, %v971_v4  ;;  %v959_v11 = vadd.f32 %v1904_v57, %v850_v7  ;;  %v977_v14 = vmax.f32 %v961_v9, 0.0 }
 0x205   : > { %v2283_v10 = vpop.f32.mrf.mxu1 }
 0x206   : > { %2067 = vst [vmem:[#allocation3] sm:$0xff] %v2066_v8   ;;  %v962_v12 = vadd.f32 %v2283_v10, %v1904_v57  ;;  %v975_v18 = vmax.f32 %v959_v11, 0.0 }
 0x207   : > { %v853_v13 = vpop.f32.mrf.mxu1 }
 0x208   : > { %v978_v15 = vmax.f32 %v962_v12, 0.0  ;;  %v960_v16 = vadd.f32 %v1904_v57, %v853_v13 }
 0x209   : > { %v2286_v17 = vpop.f32.mrf.mxu1 }
 0x20a   : > { %v2081_v19 = vpack.c.bf16 %v978_v15, %v977_v14  ;;  %v976_v20 = vmax.f32 %v960_v16, 0.0  ;;  %v965_v23 = vadd.f32 %v2286_v17, %v1904_v57 }
 0x20b   : > { %v866_v21 = vpop.f32.mrf.mxu1 }
 0x20c   : > { %2152 = vst [vmem:[#allocation3 + $0x18] sm:$0xff] %v2081_v19   ;;  %v2076_v22 = vpack.c.bf16 %v976_v20, %v975_v18  ;;  %v963_v25 = vadd.f32 %v1904_v57, %v866_v21  ;;  %v981_v28 = vmax.f32 %v965_v23, 0.0 }
 0x20d   : > { %v2287_v24 = vpop.f32.mrf.mxu1 }
 0x20e   : > { %2151 = vst [vmem:[#allocation3 + $0x10] sm:$0xff] %v2076_v22   ;;  %v966_v26 = vadd.f32 %v2287_v24, %v1904_v57  ;;  %v979_v32 = vmax.f32 %v963_v25, 0.0 }
 0x20f   : > { %v869_v27 = vpop.f32.mrf.mxu1 }
 0x210   : > { %v982_v29 = vmax.f32 %v966_v26, 0.0  ;;  %v964_v30 = vadd.f32 %v1904_v57, %v869_v27 }
 0x211   : > { %v2290_v31 = vpop.f32.mrf.mxu1 }
 0x212   : > { %v2091_v33 = vpack.c.bf16 %v982_v29, %v981_v28  ;;  %v980_v34 = vmax.f32 %v964_v30, 0.0  ;;  %v969_v37 = vadd.f32 %v2290_v31, %v1904_v57 }
 0x213   : > { %v882_v35 = vpop.f32.mrf.mxu1 }
 0x214   : > { %2154 = vst [vmem:[#allocation3 + $0x28] sm:$0xff] %v2091_v33   ;;  %v2086_v36 = vpack.c.bf16 %v980_v34, %v979_v32  ;;  %v967_v39 = vadd.f32 %v1904_v57, %v882_v35  ;;  %v985_v42 = vmax.f32 %v969_v37, 0.0 }
 0x215   : > { %v2291_v38 = vpop.f32.mrf.mxu1 }
 0x216   : > { %2153 = vst [vmem:[#allocation3 + $0x20] sm:$0xff] %v2086_v36   ;;  %v970_v40 = vadd.f32 %v2291_v38, %v1904_v57  ;;  %v983_v45 = vmax.f32 %v967_v39, 0.0 }
 0x217   : > { %v885_v41 = vpop.f32.mrf.mxu1 }
 0x218   : > { %v986_v43 = vmax.f32 %v970_v40, 0.0  ;;  %v968_v44 = vadd.f32 %v1904_v57, %v885_v41 }
 0x21a   : > { %v2101_v46 = vpack.c.bf16 %v986_v43, %v985_v42  ;;  %v984_v47 = vmax.f32 %v968_v44, 0.0 }
 0x21c   : > { %2156 = vst [vmem:[#allocation3 + $0x38] sm:$0xff] %v2101_v46   ;;  %v2096_v48 = vpack.c.bf16 %v984_v47, %v983_v45 }
 0x21e   : > { %2155 = vst [vmem:[#allocation3 + $0x30] sm:$0xff] %v2096_v48  }
 0x21f PF: > { %p1921_p5 = scmp.ne.s32.totalorder %s2458_s21, 1 }
 0x221   : > { %1074 = sbr.rel (%p1921_p5) target bundleno = 1072 (0x430), region = 64 }
 0x226   : > { %v2412_v49 = vld [vmem:[%s2712_s4 + $0x38] sm:$0xff]   ;;  %v2413_v50 = vld [vmem:[%s2712_s4 + $0x30] sm:$0xff]   ;;  %v2414_v51 = vld [vmem:[%s2712_s4 + $0x28] sm:$0xff]  }
 0x227   : > { %2292 = vmatprep.subr.bf16.mxu0 %v2412_v49  ;;  %v2415_v52 = vld [vmem:[%s2712_s4 + $0x20] sm:$0xff]   ;;  %v2416_v54 = vld [vmem:[%s2712_s4 + $0x18] sm:$0xff]   ;;  %v2417_v55 = vld [vmem:[%s2712_s4 + $0x10] sm:$0xff]  }
 0x228   : > { %2293 = vmatpush3.bf16.msra.mxu0 %v2412_v49  ;;  %v2420_v53 = vld [vmem:[#allocation3] sm:$0xff]   ;;  %v2418_v56 = vld [vmem:[%s2712_s4 + $0x8] sm:$0xff]   ;;  %v2422_v59 = vld [vmem:[#allocation3 + $0x10] sm:$0xff]  }
 0x229   : > { %2294 = vmatprep.subr.bf16.mxu0 %v2413_v50  ;;  %2308 = vmatprep.mubr.bf16.mxu0 %v2420_v53  ;;  %v2419_v57 = vld [vmem:[%s2712_s4] sm:$0xff]   ;;  %v2421_v58 = vld [vmem:[#allocation3 + $0x8] sm:$0xff]   ;;  %v2423_v60 = vld [vmem:[#allocation3 + $0x18] sm:$0xff]  }
 0x22a   : > { %v2424_v61 = vld [vmem:[#allocation3 + $0x20] sm:$0xff]   ;;  %v2425_v62 = vld [vmem:[#allocation3 + $0x28] sm:$0xff]   ;;  %v2426_v63 = vld [vmem:[#allocation3 + $0x30] sm:$0xff]  }
 0x22b   : > { %v2427_v0 = vld [vmem:[#allocation3 + $0x38] sm:$0xff]   ;;  %v2436_v1 = vld [vmem:[%s2709_s1] sm:$0xff]   ;;  %v2437_v34 = vld [vmem:[%s2709_s1 + $0x8] sm:$0xff]  }
 0x22c   : > { %2295 = vmatpush3.bf16.msra.mxu0 %v2413_v50  ;;  %2340 = vmatprep.mubr.bf16.mxu1 %v2436_v1  ;;  %v2438_v35 = vld [vmem:[%s2709_s1 + $0x10] sm:$0xff]   ;;  %v2439_v36 = vld [vmem:[%s2709_s1 + $0x18] sm:$0xff]   ;;  %v2440_v37 = vld [vmem:[%s2709_s1 + $0x20] sm:$0xff]  }
 0x22d   : > { %2296 = vmatprep.subr.bf16.mxu0 %v2414_v51  ;;  %v2441_v38 = vld [vmem:[%s2709_s1 + $0x28] sm:$0xff]   ;;  %v2442_v39 = vld [vmem:[%s2709_s1 + $0x30] sm:$0xff]   ;;  %v2443_v40 = vld [vmem:[%s2709_s1 + $0x38] sm:$0xff]  }
 0x22e   : > { %v1970_v41 = vld [vmem:[%s2713_s5] ss:$0 sm:$0xff] }
 0x230   : > { %2297 = vmatpush3.bf16.msra.mxu0 %v2414_v51 }
 0x231   : > { %2298 = vmatprep.subr.bf16.mxu0 %v2415_v52 }
 0x234   : > { %2299 = vmatpush3.bf16.msra.mxu0 %v2415_v52 }
 0x235   : > { %2300 = vmatprep.subr.bf16.mxu0 %v2416_v54 }
 0x238   : > { %2301 = vmatpush3.bf16.msra.mxu0 %v2416_v54 }
 0x239   : > { %2302 = vmatprep.subr.bf16.mxu0 %v2417_v55 }
 0x23c   : > { %2303 = vmatpush3.bf16.msra.mxu0 %v2417_v55 }
 0x23d   : > { %2304 = vmatprep.subr.bf16.mxu0 %v2418_v56 }
 0x240   : > { %2305 = vmatpush3.bf16.msra.mxu0 %v2418_v56 }
 0x241   : > { %2306 = vmatprep.subr.bf16.mxu0 %v2419_v57 }
 0x244   : > { %2307 = vmatpush3.bf16.msra.mxu0 %v2419_v57 }
 0x247   : > { %2309 = vmatmul.mubr.bf16.vlgmr.msra.gmra.mxu0 %v2421_v58 }
 0x248   : > { %2312 = vmatprep.mubr.bf16.mxu0 %v2422_v59 }
 0x24f   : > { %2313 = vmatmul.mubr.bf16.gmra.mxu0 %v2423_v60 }
 0x250   : > { %2316 = vmatprep.mubr.bf16.mxu0 %v2424_v61 }
 0x257   : > { %2317 = vmatmul.mubr.bf16.gmra.mxu0 %v2425_v62 }
 0x258   : > { %2320 = vmatprep.mubr.bf16.mxu0 %v2426_v63 }
 0x25f   : > { %2321 = vmatmul.mubr.bf16.gmra.mxu0 %v2427_v0 }
 0x307   : > { %v2310_v2 = vpop.f32.mrf.mxu0 }
 0x309   : > { %v1245_v3 = vpop.f32.mrf.mxu0 }
 0x30b   : > { %v2311_v4 = vpop.f32.mrf.mxu0 }
 0x30c   : > { %v2111_v5 = vpack.c.bf16 %v2311_v4, %v2310_v2 }
 0x30d   : > { %v1248_v6 = vpop.f32.mrf.mxu0 }
 0x30e   : > { %2157 = vst [vmem:[#allocation4 + $0x8] sm:$0xff] %v2111_v5   ;;  %v2106_v7 = vpack.c.bf16 %v1248_v6, %v1245_v3 }
 0x30f   : > { %v2314_v8 = vpop.f32.mrf.mxu0 }
 0x310   : > { %2107 = vst [vmem:[#allocation4] sm:$0xff] %v2106_v7  }
 0x311   : > { %v1261_v9 = vpop.f32.mrf.mxu0 }
 0x313   : > { %v2315_v10 = vpop.f32.mrf.mxu0 }
 0x314   : > { %v2121_v11 = vpack.c.bf16 %v2315_v10, %v2314_v8 }
 0x315   : > { %v1264_v12 = vpop.f32.mrf.mxu0  ;;  %v2434_v32 = vld [vmem:[#allocation4 + $0x8] sm:$0xff]  }
 0x316   : > { %2159 = vst [vmem:[#allocation4 + $0x18] sm:$0xff] %v2121_v11   ;;  %v2116_v13 = vpack.c.bf16 %v1264_v12, %v1261_v9 }
 0x317   : > { %v2318_v14 = vpop.f32.mrf.mxu0  ;;  %v2435_v33 = vld [vmem:[#allocation4] sm:$0xff]  }
 0x318   : > { %2158 = vst [vmem:[#allocation4 + $0x10] sm:$0xff] %v2116_v13  }
 0x319   : > { %v1277_v15 = vpop.f32.mrf.mxu0 }
 0x31b   : > { %v2319_v16 = vpop.f32.mrf.mxu0 }
 0x31c   : > { %v2131_v17 = vpack.c.bf16 %v2319_v16, %v2318_v14 }
 0x31d   : > { %v1280_v18 = vpop.f32.mrf.mxu0  ;;  %v2432_v30 = vld [vmem:[#allocation4 + $0x18] sm:$0xff]  }
 0x31e   : > { %2161 = vst [vmem:[#allocation4 + $0x28] sm:$0xff] %v2131_v17   ;;  %v2126_v19 = vpack.c.bf16 %v1280_v18, %v1277_v15 }
 0x31f   : > { %v2322_v20 = vpop.f32.mrf.mxu0  ;;  %v2433_v31 = vld [vmem:[#allocation4 + $0x10] sm:$0xff]  }
 0x320   : > { %2160 = vst [vmem:[#allocation4 + $0x20] sm:$0xff] %v2126_v19  }
 0x321   : > { %v1293_v21 = vpop.f32.mrf.mxu0 }
 0x323   : > { %v2323_v22 = vpop.f32.mrf.mxu0 }
 0x324   : > { %v2141_v23 = vpack.c.bf16 %v2323_v22, %v2322_v20 }
 0x325   : > { %v1296_v24 = vpop.f32.mrf.mxu0  ;;  %v2430_v28 = vld [vmem:[#allocation4 + $0x28] sm:$0xff]  }
 0x326   : > { %2163 = vst [vmem:[#allocation4 + $0x38] sm:$0xff] %v2141_v23   ;;  %v2136_v25 = vpack.c.bf16 %v1296_v24, %v1293_v21 }
 0x327   : > { %v2431_v29 = vld [vmem:[#allocation4 + $0x20] sm:$0xff]  }
 0x328   : > { %2162 = vst [vmem:[#allocation4 + $0x30] sm:$0xff] %v2136_v25  }
 0x32d   : > { %v2428_v26 = vld [vmem:[#allocation4 + $0x38] sm:$0xff]  }
 0x32e   : > { %2324 = vmatprep.subr.bf16.mxu1 %v2428_v26 }
 0x32f   : > { %v2429_v27 = vld [vmem:[#allocation4 + $0x30] sm:$0xff]   ;;  %2325 = vmatpush3.bf16.msra.mxu1 %v2428_v26 }
 0x330   : > { %2326 = vmatprep.subr.bf16.mxu1 %v2429_v27 }
 0x333   : > { %2327 = vmatpush3.bf16.msra.mxu1 %v2429_v27 }
 0x334   : > { %2328 = vmatprep.subr.bf16.mxu1 %v2430_v28 }
 0x337   : > { %2329 = vmatpush3.bf16.msra.mxu1 %v2430_v28 }
 0x338   : > { %2330 = vmatprep.subr.bf16.mxu1 %v2431_v29 }
 0x33b   : > { %2331 = vmatpush3.bf16.msra.mxu1 %v2431_v29 }
 0x33c   : > { %2332 = vmatprep.subr.bf16.mxu1 %v2432_v30 }
 0x33f   : > { %2333 = vmatpush3.bf16.msra.mxu1 %v2432_v30 }
 0x340   : > { %2334 = vmatprep.subr.bf16.mxu1 %v2433_v31 }
 0x343   : > { %2335 = vmatpush3.bf16.msra.mxu1 %v2433_v31 }
 0x344   : > { %2336 = vmatprep.subr.bf16.mxu1 %v2434_v32 }
 0x347   : > { %2337 = vmatpush3.bf16.msra.mxu1 %v2434_v32 }
 0x348   : > { %2338 = vmatprep.subr.bf16.mxu1 %v2435_v33 }
 0x34b   : > { %2339 = vmatpush3.bf16.msra.mxu1 %v2435_v33 }
 0x34e   : > { %2341 = vmatmul.mubr.bf16.vlgmr.msra.gmra.mxu1 %v2437_v34 }
 0x34f   : > { %2344 = vmatprep.mubr.bf16.mxu1 %v2438_v35 }
 0x356   : > { %2345 = vmatmul.mubr.bf16.gmra.mxu1 %v2439_v36 }
 0x357   : > { %2348 = vmatprep.mubr.bf16.mxu1 %v2440_v37 }
 0x35e   : > { %2349 = vmatmul.mubr.bf16.gmra.mxu1 %v2441_v38 }
 0x35f   : > { %2352 = vmatprep.mubr.bf16.mxu1 %v2442_v39 }
 0x366   : > { %2353 = vmatmul.mubr.bf16.gmra.mxu1 %v2443_v40 }
 0x40e   : > { %v2342_v42 = vpop.f32.mrf.mxu1 }
 0x40f   : > { %v1715_v43 = vadd.f32 %v2342_v42, %v1970_v41 }
 0x410   : > { %v1592_v44 = vpop.f32.mrf.mxu1 }
 0x411   : > { %1731 = vst [vmem:[%s2714_s6 + $0x10] sm:$0xff] %v1715_v43  ;;  %v1713_v45 = vadd.f32 %v1970_v41, %v1592_v44 }
 0x412   : > { %v2343_v46 = vpop.f32.mrf.mxu1 }
 0x413   : > { %1729 = vst [vmem:[%s2714_s6] sm:$0xff] %v1713_v45  ;;  %v1716_v47 = vadd.f32 %v2343_v46, %v1970_v41 }
 0x414   : > { %v1595_v48 = vpop.f32.mrf.mxu1 }
 0x415   : > { %1732 = vst [vmem:[%s2714_s6 + $0x18] sm:$0xff] %v1716_v47  ;;  %v1714_v49 = vadd.f32 %v1970_v41, %v1595_v48 }
 0x416   : > { %v2346_v50 = vpop.f32.mrf.mxu1 }
 0x417   : > { %1730 = vst [vmem:[%s2714_s6 + $0x8] sm:$0xff] %v1714_v49  ;;  %v1719_v51 = vadd.f32 %v2346_v50, %v1970_v41 }
 0x418   : > { %v1608_v52 = vpop.f32.mrf.mxu1 }
 0x419   : > { %1735 = vst [vmem:[%s2714_s6 + $0x30] sm:$0xff] %v1719_v51  ;;  %v1717_v53 = vadd.f32 %v1970_v41, %v1608_v52 }
 0x41a   : > { %v2347_v54 = vpop.f32.mrf.mxu1 }
 0x41b   : > { %1733 = vst [vmem:[%s2714_s6 + $0x20] sm:$0xff] %v1717_v53  ;;  %v1720_v55 = vadd.f32 %v2347_v54, %v1970_v41 }
 0x41c   : > { %v1611_v56 = vpop.f32.mrf.mxu1 }
 0x41d   : > { %1736 = vst [vmem:[%s2714_s6 + $0x38] sm:$0xff] %v1720_v55  ;;  %v1718_v57 = vadd.f32 %v1970_v41, %v1611_v56 }
 0x41e   : > { %v2350_v58 = vpop.f32.mrf.mxu1 }
 0x41f   : > { %1734 = vst [vmem:[%s2714_s6 + $0x28] sm:$0xff] %v1718_v57  ;;  %v1723_v59 = vadd.f32 %v2350_v58, %v1970_v41 }
 0x420   : > { %v1624_v60 = vpop.f32.mrf.mxu1 }
 0x421   : > { %1739 = vst [vmem:[%s2714_s6 + $0x50] sm:$0xff] %v1723_v59  ;;  %v1721_v61 = vadd.f32 %v1970_v41, %v1624_v60 }
 0x422   : > { %v2351_v62 = vpop.f32.mrf.mxu1 }
 0x423   : > { %1737 = vst [vmem:[%s2714_s6 + $0x40] sm:$0xff] %v1721_v61  ;;  %v1724_v63 = vadd.f32 %v2351_v62, %v1970_v41 }
 0x424   : > { %v1627_v0 = vpop.f32.mrf.mxu1 }
 0x425   : > { %1740 = vst [vmem:[%s2714_s6 + $0x58] sm:$0xff] %v1724_v63  ;;  %v1722_v1 = vadd.f32 %v1970_v41, %v1627_v0 }
 0x426   : > { %v2354_v2 = vpop.f32.mrf.mxu1 }
 0x427   : > { %1738 = vst [vmem:[%s2714_s6 + $0x48] sm:$0xff] %v1722_v1  ;;  %v1727_v3 = vadd.f32 %v2354_v2, %v1970_v41 }
 0x428   : > { %v1640_v4 = vpop.f32.mrf.mxu1 }
 0x429   : > { %1743 = vst [vmem:[%s2714_s6 + $0x70] sm:$0xff] %v1727_v3  ;;  %v1725_v5 = vadd.f32 %v1970_v41, %v1640_v4 }
 0x42a   : > { %v2355_v6 = vpop.f32.mrf.mxu1 }
 0x42b   : > { %1741 = vst [vmem:[%s2714_s6 + $0x60] sm:$0xff] %v1725_v5  ;;  %v1728_v7 = vadd.f32 %v2355_v6, %v1970_v41 }
 0x42c   : > { %v1643_v8 = vpop.f32.mrf.mxu1 }
 0x42d   : > { %1744 = vst [vmem:[%s2714_s6 + $0x78] sm:$0xff] %v1728_v7  ;;  %v1726_v9 = vadd.f32 %v1970_v41, %v1643_v8 }
 0x42f   : > { %1742 = vst [vmem:[%s2714_s6 + $0x68] sm:$0xff] %v1726_v9 }
 0x430 PF: > { %s16_s23 = sadd.s32 1, %s2466_s23   ;;  %s2715_s21 = smov %s2462_s22 }
 0x431   : > { %p13_p6 = scmp.ge.s32.totalorder %s16_s23, 4   ;;  %s2716_s22 = smov %s2718_s24 }
 0x433   :  { %15 = sbr.rel (!%p13_p6) target bundleno = 2 (0x2), region = 115 }

</bundles_post_ra>
